<compile_context>
chip_gen: v7x
topology: tpu7x:2x2x1
jax: 0.10.0
libtpu: 0.0.40
codegen_flags: <defaults>
</compile_context>

<pallas_src>
import jax
import jax.numpy as jnp
from jax import lax
from jax.experimental import pallas as pl
from jax.experimental.pallas import tpu as pltpu


# ---------------------------------------------------------------------------
# Kernels
# ---------------------------------------------------------------------------
def _conv_pair(x_ref, w1_ref, w2_ref):
    """relu + the two stride-2 1x1 convs on one spatial tile.

    x_ref block is (2, 1, C_in, ts): [0] = even input columns (conv_1 input),
    [1] = odd input columns (conv_2 input).  Spatial sits on lanes, channels on
    sublanes, so each conv is one W(C_out/2, C_in) @ X(C_in, ts) MXU matmul.
    """
    xe = jnp.maximum(x_ref[0, 0], 0.0)                                   # (C_in, ts)
    xo = jnp.maximum(x_ref[1, 0], 0.0)                                   # (C_in, ts)
    y1 = jnp.dot(w1_ref[...], xe, preferred_element_type=jnp.float32)    # (Co2, ts)
    y2 = jnp.dot(w2_ref[...], xo, preferred_element_type=jnp.float32)    # (Co2, ts)
    return y1, y2


def _make_stats_kernel(ts, S):
    """Pass 1: relu + convs -> running per-channel (mean, M2) over the tile axis."""

    def kernel(x_ref, w1_ref, w2_ref, mean_ref, m2_ref):
        j = pl.program_id(1)

        @pl.when(j == 0)
        def _():
            mean_ref[...] = jnp.zeros_like(mean_ref)
            m2_ref[...] = jnp.zeros_like(m2_ref)

        y1, y2 = _conv_pair(x_ref, w1_ref, w2_ref)

        # Only the last tile can be ragged; mask its invalid lanes.
        n_a_i = j * ts                               # elements already accumulated
        n_t_i = jnp.minimum(ts, S - n_a_i)           # valid lanes in this tile
        lane = lax.broadcasted_iota(jnp.int32, (1, ts), 1)
        valid = lane < n_t_i

        n_a = n_a_i.astype(jnp.float32)
        n_t = n_t_i.astype(jnp.float32)
        n_ab = n_a + n_t
        inv_nt = 1.0 / n_t

        # Chan's parallel-variance combine of this tile into the running stats
        # (numerically safe vs. plain sum / sum-of-squares).
        for h, y in ((0, y1), (1, y2)):
            ym = jnp.where(valid, y, 0.0)
            mu_t = jnp.sum(ym, axis=1, keepdims=True) * inv_nt          # (Co2, 1)
            d = jnp.where(valid, y - mu_t, 0.0)
            m2_t = jnp.sum(d * d, axis=1, keepdims=True)                # (Co2, 1)

            mean_v = mean_ref.at[0, h]
            m2_v = m2_ref.at[0, h]
            delta = mu_t - mean_v[...]
            mean_v[...] = mean_v[...] + delta * (n_t / n_ab)
            m2_v[...] = m2_v[...] + m2_t + (delta * delta) * (n_a * n_t / n_ab)

    return kernel


def _fr_apply_kernel(x_ref, w1_ref, w2_ref, sh_ref, o_ref):
    """Pass 2: recompute relu + convs with BN-scale-folded weights, add shift."""
    y1, y2 = _conv_pair(x_ref, w1_ref, w2_ref)   # scale already folded into weights
    co2 = y1.shape[0]
    o_ref[0, :co2, :] = (y1 + sh_ref[0]).astype(o_ref.dtype)
    o_ref[0, co2:, :] = (y2 + sh_ref[1]).astype(o_ref.dtype)


# ---------------------------------------------------------------------------
# Wrapper
# ---------------------------------------------------------------------------
def _vmem_profile():
    """(working_set_budget, vmem_limit) bytes.  Conservative (v7x-safe, 64 MiB
    physical VMEM) unless the chip reports >=100 MiB (v5e/v6e)."""
    budget, limit = 22 * 1024 * 1024, 48 * 1024 * 1024
    try:
        cap = pltpu.get_tpu_info().vmem_capacity_bytes
        if cap >= 100 * 1024 * 1024:
            budget, limit = 36 * 1024 * 1024, 80 * 1024 * 1024
    except Exception:
        pass
    return budget, limit


def _pick_spatial_tile(S, c_in, c_out, budget_bytes):
    """Largest lane tile whose per-step working set (double-buffered x/out blocks
    plus in-kernel intermediates) fits the budget; prefer divisors of S so no
    tile is ragged."""
    bytes_per_lane = 4 * (6 * c_in + 4 * c_out)
    cap = (budget_bytes // bytes_per_lane) // 128 * 128
    cap = max(128, min(cap, 16384))
    if S <= cap:
        return S                                   # single full-extent tile
    t = cap
    while t >= max(128, cap // 2):                 # divisor of S, if a big one exists
        if S % t == 0:
            return t
        t -= 128
    return cap                                     # ragged last tile (masked in pass 1)


def factorized_reduce_pallas(x, w1, w2, gamma, beta, eps=1e-5):
    """DARTS FactorizedReduceOriginal forward (BatchNorm in training mode).

    x:      (N, C_in, H, W) float32, W even
    w1, w2: (C_out//2, C_in, 1, 1)  conv_1 / conv_2 weights (bias=False)
    gamma, beta: (C_out,)           BatchNorm affine parameters
    returns (N, C_out, H, W // 2)
    """
    N, C_in, H, W = x.shape
    assert W % 2 == 0, "FactorizedReduceOriginal requires even W (torch.cat would fail)"
    Co2 = w1.shape[0]
    C_out = 2 * Co2
    Wout = W // 2
    S = H * Wout

    # Even/odd column split as ONE XLA transpose (single read + write of x).
    # xp[0] feeds conv_1 (even columns), xp[1] feeds conv_2 (odd columns).
    # TODO(synk): replace with an in-kernel lane-stride-2 split once Mosaic
    # supports strided lane loads; that would remove this HBM round trip.
    xp = jnp.moveaxis(x.reshape(N, C_in, S, 2), -1, 0)      # (2, N, C_in, S)

    budget, vmem_limit = _vmem_profile()
    ts = _pick_spatial_tile(S, C_in, C_out, budget)
    n_tiles = pl.cdiv(S, ts)

    w1m = w1.reshape(Co2, C_in).astype(jnp.float32)
    w2m = w2.reshape(Co2, C_in).astype(jnp.float32)

    x_spec = pl.BlockSpec((2, 1, C_in, ts), lambda n, j: (0, n, 0, j))
    w_spec = pl.BlockSpec((Co2, C_in), lambda n, j: (0, 0))
    stat_spec = pl.BlockSpec((1, 2, Co2, 1), lambda n, j: (n, 0, 0, 0))  # resident in j

    # -- Pass 1: relu + convs -> per-(n, channel) running (mean, M2) ----------
    mean_nb, m2_nb = pl.pallas_call(
        _make_stats_kernel(ts, S),
        out_shape=(jax.ShapeDtypeStruct((N, 2, Co2, 1), jnp.float32),
                   jax.ShapeDtypeStruct((N, 2, Co2, 1), jnp.float32)),
        grid_spec=pltpu.PrefetchScalarGridSpec(
            num_scalar_prefetch=0,
            grid=(N, n_tiles),
            in_specs=[x_spec, w_spec, w_spec],
            out_specs=(stat_spec, stat_spec),
        ),
        compiler_params=pltpu.CompilerParams(
            dimension_semantics=("parallel", "arbitrary"),
            vmem_limit_bytes=vmem_limit),
    )(xp, w1m, w2m)

    # Tiny host-side combine across the batch axis (equal counts S each); exact
    # between-group term, no E[y^2]-E[y]^2 cancellation.  Then fold BN so that
    # pass 2 only computes (scale*W) @ x + shift.
    means = mean_nb.reshape(N, C_out)
    m2s = m2_nb.reshape(N, C_out)
    mean = jnp.mean(means, axis=0)
    m2 = jnp.sum(m2s, axis=0) + jnp.float32(S) * jnp.sum((means - mean) ** 2, axis=0)
    var = m2 / jnp.float32(N * S)                              # biased var (BN training fwd)
    scale = gamma.astype(jnp.float32) / jnp.sqrt(var + eps)
    shift = beta.astype(jnp.float32) - mean * scale

    w1s = w1m * scale[:Co2, None]
    w2s = w2m * scale[Co2:, None]
    sh = shift.reshape(2, Co2, 1)

    # -- Pass 2: recompute relu + convs with folded scale, lane-dense output ---
    out = pl.pallas_call(
        _fr_apply_kernel,
        out_shape=jax.ShapeDtypeStruct((N, C_out, S), x.dtype),
        grid_spec=pltpu.PrefetchScalarGridSpec(
            num_scalar_prefetch=0,
            grid=(N, n_tiles),
            in_specs=[x_spec, w_spec, w_spec,
                      pl.BlockSpec((2, Co2, 1), lambda n, j: (0, 0, 0))],
            out_specs=pl.BlockSpec((1, C_out, ts), lambda n, j: (n, 0, j)),
        ),
        compiler_params=pltpu.CompilerParams(
            dimension_semantics=("parallel", "parallel"),
            vmem_limit_bytes=vmem_limit),
    )(xp, w1s, w2s, sh)

    return out.reshape(N, C_out, H, Wout)                     # free reshape, no slice


# ---------------------------------------------------------------------------
# Pure-JAX reference (mirrors the PyTorch module's forward in training mode)
# ---------------------------------------------------------------------------
def _reference(x, w1, w2, gamma, beta, eps=1e-5):
    xr = jnp.maximum(x, 0.0)
    w1m = w1[:, :, 0, 0]
    w2m = w2[:, :, 0, 0]
    y1 = jnp.einsum("oc,nchw->nohw", w1m, xr[:, :, :, 0::2])
    y2 = jnp.einsum("oc,nchw->nohw", w2m, xr[:, :, :, 1::2])
    y = jnp.concatenate([y1, y2], axis=1)
    mean = jnp.mean(y, axis=(0, 2, 3), keepdims=True)
    var = jnp.var(y, axis=(0, 2, 3), keepdims=True)            # biased, like BN training fwd
    y = (y - mean) / jnp.sqrt(var + eps)
    return y * gamma.reshape(1, -1, 1, 1) + beta.reshape(1, -1, 1, 1)


if __name__ == "__main__":
    key = jax.random.PRNGKey(0)
    kx, kw1, kw2, kg, kb = jax.random.split(key, 5)

    N, C_in, H, W = 2, 4, 16, 16
    C_out = 8                                    # C_out % 2 == 0

    x = jax.random.normal(kx, (N, C_in, H, W), jnp.float32)
    bound = 1.0 / (C_in ** 0.5)                  # PyTorch Conv2d default init range (k=1)
    w1 = jax.random.uniform(kw1, (C_out // 2, C_in, 1, 1), jnp.float32, -bound, bound)
    w2 = jax.random.uniform(kw2, (C_out // 2, C_in, 1, 1), jnp.float32, -bound, bound)
    gamma = jax.random.uniform(kg, (C_out,), jnp.float32, 0.5, 1.5)
    beta = jax.random.uniform(kb, (C_out,), jnp.float32, -0.5, 0.5)

    fwd = jax.jit(factorized_reduce_pallas)
    out = jax.block_until_ready(fwd(x, w1, w2, gamma, beta))

    expected = _reference(x, w1, w2, gamma, beta)
    assert out.shape == (N, C_out, H, W // 2), out.shape
    assert jnp.allclose(out, expected, atol=1e-4, rtol=1e-4), \
        float(jnp.max(jnp.abs(out - expected)))

    print("KERNEL_OK")
</pallas_src>

<mosaic_0001>
module attributes {stable_mosaic.version = 11 : i64} {
  func.func @kernel(%arg0: i32, %arg1: i32, %arg2: memref<2x1x4x128xf32, #tpu.memory_space<vmem>>, %arg3: memref<4x4xf32, #tpu.memory_space<vmem>>, %arg4: memref<4x4xf32, #tpu.memory_space<vmem>>, %arg5: memref<1x2x4x1xf32, #tpu.memory_space<vmem>>, %arg6: memref<1x2x4x1xf32, #tpu.memory_space<vmem>>) attributes {dimension_semantics = [#tpu.dimension_semantics<parallel>, #tpu.dimension_semantics<arbitrary>], iteration_bounds = array<i64: 2, 1>, scalar_prefetch = 0 : i64, scratch_operands = 0 : i64, tpu.core_type = #tpu.core_type<tc>, window_params = [{transform_indices = @transform_0, window_bounds = array<i64: 2, 1, 4, 128>}, {pipeline_mode = #tpu.pipeline_mode<synchronous>, transform_indices = @transform_1, window_bounds = array<i64: 4, 4>}, {pipeline_mode = #tpu.pipeline_mode<synchronous>, transform_indices = @transform_2, window_bounds = array<i64: 4, 4>}, {transform_indices = @transform_3, window_bounds = array<i64: 1, 2, 4, 1>}, {transform_indices = @transform_4, window_bounds = array<i64: 1, 2, 4, 1>}]} {
    %c0_i32 = arith.constant 0 : i32
    %0 = arith.cmpi eq, %arg1, %c0_i32 : i32
    %1 = arith.extui %0 : i1 to i32
    %c0_i32_0 = arith.constant 0 : i32
    %2 = arith.cmpi ne, %1, %c0_i32_0 : i32
    scf.if %2 {
      %cst_65 = arith.constant 0.000000e+00 : f32
      %107 = vector.broadcast %cst_65 : f32 to vector<1x2x4x1xf32>
      %c0_66 = arith.constant 0 : index
      %c0_67 = arith.constant 0 : index
      %c0_68 = arith.constant 0 : index
      %c0_69 = arith.constant 0 : index
      %108 = vector.load %arg5[%c0_66, %c0_67, %c0_68, %c0_69] : memref<1x2x4x1xf32, #tpu.memory_space<vmem>>, vector<1x2x4x1xf32>
      tpu.vector_store %arg5[%c0_66, %c0_67, %c0_68, %c0_69], %107 {strides = array<i32>} : memref<1x2x4x1xf32, #tpu.memory_space<vmem>>, vector<1x2x4x1xf32>,
      %cst_70 = arith.constant 0.000000e+00 : f32
      %109 = vector.broadcast %cst_70 : f32 to vector<1x2x4x1xf32>
      %c0_71 = arith.constant 0 : index
      %c0_72 = arith.constant 0 : index
      %c0_73 = arith.constant 0 : index
      %c0_74 = arith.constant 0 : index
      %110 = vector.load %arg6[%c0_71, %c0_72, %c0_73, %c0_74] : memref<1x2x4x1xf32, #tpu.memory_space<vmem>>, vector<1x2x4x1xf32>
      tpu.vector_store %arg6[%c0_71, %c0_72, %c0_73, %c0_74], %109 {strides = array<i32>} : memref<1x2x4x1xf32, #tpu.memory_space<vmem>>, vector<1x2x4x1xf32>,
    } else {
    }
    %c0 = arith.constant 0 : index
    %c0_1 = arith.constant 0 : index
    %c0_2 = arith.constant 0 : index
    %c0_3 = arith.constant 0 : index
    %3 = vector.load %arg2[%c0, %c0_1, %c0_2, %c0_3] : memref<2x1x4x128xf32, #tpu.memory_space<vmem>>, vector<1x1x4x128xf32>
    %4 = vector.shape_cast %3 : vector<1x1x4x128xf32> to vector<4x128xf32>
    %cst = arith.constant 0.000000e+00 : f32
    %5 = vector.broadcast %cst : f32 to vector<4x128xf32>
    %6 = arith.maximumf %4, %5 : vector<4x128xf32>
    %c1 = arith.constant 1 : index
    %c0_4 = arith.constant 0 : index
    %c0_5 = arith.constant 0 : index
    %c0_6 = arith.constant 0 : index
    %7 = vector.load %arg2[%c1, %c0_4, %c0_5, %c0_6] : memref<2x1x4x128xf32, #tpu.memory_space<vmem>>, vector<1x1x4x128xf32>
    %8 = vector.shape_cast %7 : vector<1x1x4x128xf32> to vector<4x128xf32>
    %cst_7 = arith.constant 0.000000e+00 : f32
    %9 = vector.broadcast %cst_7 : f32 to vector<4x128xf32>
    %10 = arith.maximumf %8, %9 : vector<4x128xf32>
    %c0_8 = arith.constant 0 : index
    %c0_9 = arith.constant 0 : index
    %11 = vector.load %arg3[%c0_8, %c0_9] : memref<4x4xf32, #tpu.memory_space<vmem>>, vector<4x4xf32>
    %cst_10 = arith.constant dense<0.000000e+00> : vector<4x128xf32>
    %12 = tpu.matmul %11, %6, %cst_10 {dimension_numbers = #tpu.dot_dimension_numbers<[1], [0], [0], [1], [0, 0, 1, 1], [], []>} : vector<4x4xf32>, vector<4x128xf32>, vector<4x128xf32> -> vector<4x128xf32>
    %c0_11 = arith.constant 0 : index
    %c0_12 = arith.constant 0 : index
    %13 = vector.load %arg4[%c0_11, %c0_12] : memref<4x4xf32, #tpu.memory_space<vmem>>, vector<4x4xf32>
    %cst_13 = arith.constant dense<0.000000e+00> : vector<4x128xf32>
    %14 = tpu.matmul %13, %10, %cst_13 {dimension_numbers = #tpu.dot_dimension_numbers<[1], [0], [0], [1], [0, 0, 1, 1], [], []>} : vector<4x4xf32>, vector<4x128xf32>, vector<4x128xf32> -> vector<4x128xf32>
    %c128_i32 = arith.constant 128 : i32
    %15 = arith.muli %arg1, %c128_i32 : i32
    %c128_i32_14 = arith.constant 128 : i32
    %16 = arith.subi %c128_i32_14, %15 : i32
    %c128_i32_15 = arith.constant 128 : i32
    %17 = arith.minsi %c128_i32_15, %16 : i32
    %18 = tpu.iota {dimensions = array<i32: 1>} : vector<1x128xi32>
    %19 = vector.broadcast %17 : i32 to vector<1x128xi32>
    %20 = arith.cmpi slt, %18, %19 : vector<1x128xi32>
    %21 = arith.sitofp %15 : i32 to f32
    %22 = arith.sitofp %17 : i32 to f32
    %23 = arith.addf %21, %22 : f32
    %cst_16 = arith.constant 1.000000e+00 : f32
    %24 = arith.divf %cst_16, %22 : f32
    %cst_17 = arith.constant 0.000000e+00 : f32
    %25 = vector.shape_cast %20 : vector<1x128xi1> to vector<1x128xi1>
    %26 = vector.broadcast %25 : vector<1x128xi1> to vector<4x128xi1>
    %27 = vector.broadcast %cst_17 : f32 to vector<4x128xf32>
    %28 = arith.select %26, %12, %27 : vector<4x128xi1>, vector<4x128xf32>
    %cst_18 = arith.constant dense<0.000000e+00> : vector<4xf32>
    %29 = vector.multi_reduction <add>, %28, %cst_18 [1] : vector<4x128xf32> to vector<4xf32>
    %30 = vector.shape_cast %29 : vector<4xf32> to vector<4x1xf32>
    %31 = vector.broadcast %24 : f32 to vector<4x1xf32>
    %32 = arith.mulf %30, %31 : vector<4x1xf32>
    %33 = vector.broadcast %32 : vector<4x1xf32> to vector<4x128xf32>
    %34 = arith.subf %12, %33 : vector<4x128xf32>
    %cst_19 = arith.constant 0.000000e+00 : f32
    %35 = vector.shape_cast %20 : vector<1x128xi1> to vector<1x128xi1>
    %36 = vector.broadcast %35 : vector<1x128xi1> to vector<4x128xi1>
    %37 = vector.broadcast %cst_19 : f32 to vector<4x128xf32>
    %38 = arith.select %36, %34, %37 : vector<4x128xi1>, vector<4x128xf32>
    %39 = arith.mulf %38, %38 : vector<4x128xf32>
    %cst_20 = arith.constant dense<0.000000e+00> : vector<4xf32>
    %40 = vector.multi_reduction <add>, %39, %cst_20 [1] : vector<4x128xf32> to vector<4xf32>
    %41 = vector.shape_cast %40 : vector<4xf32> to vector<4x1xf32>
    %c0_21 = arith.constant 0 : index
    %c0_22 = arith.constant 0 : index
    %c0_23 = arith.constant 0 : index
    %c0_24 = arith.constant 0 : index
    %42 = vector.load %arg5[%c0_21, %c0_22, %c0_23, %c0_24] : memref<1x2x4x1xf32, #tpu.memory_space<vmem>>, vector<1x1x4x1xf32>
    %43 = vector.shape_cast %42 : vector<1x1x4x1xf32> to vector<4x1xf32>
    %44 = arith.subf %32, %43 : vector<4x1xf32>
    %c0_25 = arith.constant 0 : index
    %c0_26 = arith.constant 0 : index
    %c0_27 = arith.constant 0 : index
    %c0_28 = arith.constant 0 : index
    %45 = vector.load %arg5[%c0_25, %c0_26, %c0_27, %c0_28] : memref<1x2x4x1xf32, #tpu.memory_space<vmem>>, vector<1x1x4x1xf32>
    %46 = vector.shape_cast %45 : vector<1x1x4x1xf32> to vector<4x1xf32>
    %47 = arith.divf %22, %23 : f32
    %48 = vector.broadcast %47 : f32 to vector<4x1xf32>
    %49 = arith.mulf %44, %48 : vector<4x1xf32>
    %50 = arith.addf %46, %49 : vector<4x1xf32>
    %c0_29 = arith.constant 0 : index
    %c0_30 = arith.constant 0 : index
    %c0_31 = arith.constant 0 : index
    %c0_32 = arith.constant 0 : index
    %51 = vector.load %arg5[%c0_29, %c0_30, %c0_31, %c0_32] : memref<1x2x4x1xf32, #tpu.memory_space<vmem>>, vector<1x1x4x1xf32>
    %52 = vector.shape_cast %51 : vector<1x1x4x1xf32> to vector<4x1xf32>
    %53 = vector.shape_cast %50 : vector<4x1xf32> to vector<1x1x4x1xf32>
    tpu.vector_store %arg5[%c0_29, %c0_30, %c0_31, %c0_32], %53 {strides = array<i32>} : memref<1x2x4x1xf32, #tpu.memory_space<vmem>>, vector<1x1x4x1xf32>,
    %c0_33 = arith.constant 0 : index
    %c0_34 = arith.constant 0 : index
    %c0_35 = arith.constant 0 : index
    %c0_36 = arith.constant 0 : index
    %54 = vector.load %arg6[%c0_33, %c0_34, %c0_35, %c0_36] : memref<1x2x4x1xf32, #tpu.memory_space<vmem>>, vector<1x1x4x1xf32>
    %55 = vector.shape_cast %54 : vector<1x1x4x1xf32> to vector<4x1xf32>
    %56 = arith.addf %55, %41 : vector<4x1xf32>
    %57 = arith.mulf %44, %44 : vector<4x1xf32>
    %58 = arith.mulf %21, %22 : f32
    %59 = arith.divf %58, %23 : f32
    %60 = vector.broadcast %59 : f32 to vector<4x1xf32>
    %61 = arith.mulf %57, %60 : vector<4x1xf32>
    %62 = arith.addf %56, %61 : vector<4x1xf32>
    %c0_37 = arith.constant 0 : index
    %c0_38 = arith.constant 0 : index
    %c0_39 = arith.constant 0 : index
    %c0_40 = arith.constant 0 : index
    %63 = vector.load %arg6[%c0_37, %c0_38, %c0_39, %c0_40] : memref<1x2x4x1xf32, #tpu.memory_space<vmem>>, vector<1x1x4x1xf32>
    %64 = vector.shape_cast %63 : vector<1x1x4x1xf32> to vector<4x1xf32>
    %65 = vector.shape_cast %62 : vector<4x1xf32> to vector<1x1x4x1xf32>
    tpu.vector_store %arg6[%c0_37, %c0_38, %c0_39, %c0_40], %65 {strides = array<i32>} : memref<1x2x4x1xf32, #tpu.memory_space<vmem>>, vector<1x1x4x1xf32>,
    %cst_41 = arith.constant 0.000000e+00 : f32
    %66 = vector.shape_cast %20 : vector<1x128xi1> to vector<1x128xi1>
    %67 = vector.broadcast %66 : vector<1x128xi1> to vector<4x128xi1>
    %68 = vector.broadcast %cst_41 : f32 to vector<4x128xf32>
    %69 = arith.select %67, %14, %68 : vector<4x128xi1>, vector<4x128xf32>
    %cst_42 = arith.constant dense<0.000000e+00> : vector<4xf32>
    %70 = vector.multi_reduction <add>, %69, %cst_42 [1] : vector<4x128xf32> to vector<4xf32>
    %71 = vector.shape_cast %70 : vector<4xf32> to vector<4x1xf32>
    %72 = vector.broadcast %24 : f32 to vector<4x1xf32>
    %73 = arith.mulf %71, %72 : vector<4x1xf32>
    %74 = vector.broadcast %73 : vector<4x1xf32> to vector<4x128xf32>
    %75 = arith.subf %14, %74 : vector<4x128xf32>
    %cst_43 = arith.constant 0.000000e+00 : f32
    %76 = vector.shape_cast %20 : vector<1x128xi1> to vector<1x128xi1>
    %77 = vector.broadcast %76 : vector<1x128xi1> to vector<4x128xi1>
    %78 = vector.broadcast %cst_43 : f32 to vector<4x128xf32>
    %79 = arith.select %77, %75, %78 : vector<4x128xi1>, vector<4x128xf32>
    %80 = arith.mulf %79, %79 : vector<4x128xf32>
    %cst_44 = arith.constant dense<0.000000e+00> : vector<4xf32>
    %81 = vector.multi_reduction <add>, %80, %cst_44 [1] : vector<4x128xf32> to vector<4xf32>
    %82 = vector.shape_cast %81 : vector<4xf32> to vector<4x1xf32>
    %c0_45 = arith.constant 0 : index
    %c1_46 = arith.constant 1 : index
    %c0_47 = arith.constant 0 : index
    %c0_48 = arith.constant 0 : index
    %83 = vector.load %arg5[%c0_45, %c1_46, %c0_47, %c0_48] : memref<1x2x4x1xf32, #tpu.memory_space<vmem>>, vector<1x1x4x1xf32>
    %84 = vector.shape_cast %83 : vector<1x1x4x1xf32> to vector<4x1xf32>
    %85 = arith.subf %73, %84 : vector<4x1xf32>
    %c0_49 = arith.constant 0 : index
    %c1_50 = arith.constant 1 : index
    %c0_51 = arith.constant 0 : index
    %c0_52 = arith.constant 0 : index
    %86 = vector.load %arg5[%c0_49, %c1_50, %c0_51, %c0_52] : memref<1x2x4x1xf32, #tpu.memory_space<vmem>>, vector<1x1x4x1xf32>
    %87 = vector.shape_cast %86 : vector<1x1x4x1xf32> to vector<4x1xf32>
    %88 = arith.divf %22, %23 : f32
    %89 = vector.broadcast %88 : f32 to vector<4x1xf32>
    %90 = arith.mulf %85, %89 : vector<4x1xf32>
    %91 = arith.addf %87, %90 : vector<4x1xf32>
    %c0_53 = arith.constant 0 : index
    %c1_54 = arith.constant 1 : index
    %c0_55 = arith.constant 0 : index
    %c0_56 = arith.constant 0 : index
    %92 = vector.load %arg5[%c0_53, %c1_54, %c0_55, %c0_56] : memref<1x2x4x1xf32, #tpu.memory_space<vmem>>, vector<1x1x4x1xf32>
    %93 = vector.shape_cast %92 : vector<1x1x4x1xf32> to vector<4x1xf32>
    %94 = vector.shape_cast %91 : vector<4x1xf32> to vector<1x1x4x1xf32>
    tpu.vector_store %arg5[%c0_53, %c1_54, %c0_55, %c0_56], %94 {strides = array<i32>} : memref<1x2x4x1xf32, #tpu.memory_space<vmem>>, vector<1x1x4x1xf32>,
    %c0_57 = arith.constant 0 : index
    %c1_58 = arith.constant 1 : index
    %c0_59 = arith.constant 0 : index
    %c0_60 = arith.constant 0 : index
    %95 = vector.load %arg6[%c0_57, %c1_58, %c0_59, %c0_60] : memref<1x2x4x1xf32, #tpu.memory_space<vmem>>, vector<1x1x4x1xf32>
    %96 = vector.shape_cast %95 : vector<1x1x4x1xf32> to vector<4x1xf32>
    %97 = arith.addf %96, %82 : vector<4x1xf32>
    %98 = arith.mulf %85, %85 : vector<4x1xf32>
    %99 = arith.mulf %21, %22 : f32
    %100 = arith.divf %99, %23 : f32
    %101 = vector.broadcast %100 : f32 to vector<4x1xf32>
    %102 = arith.mulf %98, %101 : vector<4x1xf32>
    %103 = arith.addf %97, %102 : vector<4x1xf32>
    %c0_61 = arith.constant 0 : index
    %c1_62 = arith.constant 1 : index
    %c0_63 = arith.constant 0 : index
    %c0_64 = arith.constant 0 : index
    %104 = vector.load %arg6[%c0_61, %c1_62, %c0_63, %c0_64] : memref<1x2x4x1xf32, #tpu.memory_space<vmem>>, vector<1x1x4x1xf32>
    %105 = vector.shape_cast %104 : vector<1x1x4x1xf32> to vector<4x1xf32>
    %106 = vector.shape_cast %103 : vector<4x1xf32> to vector<1x1x4x1xf32>
    tpu.vector_store %arg6[%c0_61, %c1_62, %c0_63, %c0_64], %106 {strides = array<i32>} : memref<1x2x4x1xf32, #tpu.memory_space<vmem>>, vector<1x1x4x1xf32>,
    return
  }
  func.func @transform_0(%arg0: i32, %arg1: i32) -> (i32, i32, i32, i32) {
    %c0_i32 = arith.constant 0 : i32
    %c0_i32_0 = arith.constant 0 : i32
    %c0_i32_1 = arith.constant 0 : i32
    return %c0_i32, %arg0, %c0_i32_0, %arg1 : i32, i32, i32, i32
  }
  func.func @transform_1(%arg0: i32, %arg1: i32) -> (i32, i32) {
    %c0_i32 = arith.constant 0 : i32
    %c0_i32_0 = arith.constant 0 : i32
    %c0_i32_1 = arith.constant 0 : i32
    return %c0_i32, %c0_i32_0 : i32, i32
  }
  func.func @transform_2(%arg0: i32, %arg1: i32) -> (i32, i32) {
    %c0_i32 = arith.constant 0 : i32
    %c0_i32_0 = arith.constant 0 : i32
    %c0_i32_1 = arith.constant 0 : i32
    return %c0_i32, %c0_i32_0 : i32, i32
  }
  func.func @transform_3(%arg0: i32, %arg1: i32) -> (i32, i32, i32, i32) {
    %c0_i32 = arith.constant 0 : i32
    %c0_i32_0 = arith.constant 0 : i32
    %c0_i32_1 = arith.constant 0 : i32
    %c0_i32_2 = arith.constant 0 : i32
    return %arg0, %c0_i32, %c0_i32_0, %c0_i32_1 : i32, i32, i32, i32
  }
  func.func @transform_4(%arg0: i32, %arg1: i32) -> (i32, i32, i32, i32) {
    %c0_i32 = arith.constant 0 : i32
    %c0_i32_0 = arith.constant 0 : i32
    %c0_i32_1 = arith.constant 0 : i32
    %c0_i32_2 = arith.constant 0 : i32
    return %arg0, %c0_i32, %c0_i32_0, %c0_i32_1 : i32, i32, i32, i32
  }
}

module attributes {stable_mosaic.version = 11 : i64} {
  func.func @_fr_apply_kernel(%arg0: i32, %arg1: i32, %arg2: memref<2x1x4x128xf32, #tpu.memory_space<vmem>>, %arg3: memref<4x4xf32, #tpu.memory_space<vmem>>, %arg4: memref<4x4xf32, #tpu.memory_space<vmem>>, %arg5: memref<2x4x1xf32, #tpu.memory_space<vmem>>, %arg6: memref<1x8x128xf32, #tpu.memory_space<vmem>>) attributes {dimension_semantics = [#tpu.dimension_semantics<parallel>, #tpu.dimension_semantics<parallel>], iteration_bounds = array<i64: 2, 1>, scalar_prefetch = 0 : i64, scratch_operands = 0 : i64, tpu.core_type = #tpu.core_type<tc>, window_params = [{transform_indices = @transform_0, window_bounds = array<i64: 2, 1, 4, 128>}, {pipeline_mode = #tpu.pipeline_mode<synchronous>, transform_indices = @transform_1, window_bounds = array<i64: 4, 4>}, {pipeline_mode = #tpu.pipeline_mode<synchronous>, transform_indices = @transform_2, window_bounds = array<i64: 4, 4>}, {pipeline_mode = #tpu.pipeline_mode<synchronous>, transform_indices = @transform_3, window_bounds = array<i64: 2, 4, 1>}, {transform_indices = @transform_4, window_bounds = array<i64: 1, 8, 128>}]} {
    %c0 = arith.constant 0 : index
    %c0_0 = arith.constant 0 : index
    %c0_1 = arith.constant 0 : index
    %c0_2 = arith.constant 0 : index
    %0 = vector.load %arg2[%c0, %c0_0, %c0_1, %c0_2] : memref<2x1x4x128xf32, #tpu.memory_space<vmem>>, vector<1x1x4x128xf32>
    %1 = vector.shape_cast %0 : vector<1x1x4x128xf32> to vector<4x128xf32>
    %cst = arith.constant 0.000000e+00 : f32
    %2 = vector.broadcast %cst : f32 to vector<4x128xf32>
    %3 = arith.maximumf %1, %2 : vector<4x128xf32>
    %c1 = arith.constant 1 : index
    %c0_3 = arith.constant 0 : index
    %c0_4 = arith.constant 0 : index
    %c0_5 = arith.constant 0 : index
    %4 = vector.load %arg2[%c1, %c0_3, %c0_4, %c0_5] : memref<2x1x4x128xf32, #tpu.memory_space<vmem>>, vector<1x1x4x128xf32>
    %5 = vector.shape_cast %4 : vector<1x1x4x128xf32> to vector<4x128xf32>
    %cst_6 = arith.constant 0.000000e+00 : f32
    %6 = vector.broadcast %cst_6 : f32 to vector<4x128xf32>
    %7 = arith.maximumf %5, %6 : vector<4x128xf32>
    %c0_7 = arith.constant 0 : index
    %c0_8 = arith.constant 0 : index
    %8 = vector.load %arg3[%c0_7, %c0_8] : memref<4x4xf32, #tpu.memory_space<vmem>>, vector<4x4xf32>
    %cst_9 = arith.constant dense<0.000000e+00> : vector<4x128xf32>
    %9 = tpu.matmul %8, %3, %cst_9 {dimension_numbers = #tpu.dot_dimension_numbers<[1], [0], [0], [1], [0, 0, 1, 1], [], []>} : vector<4x4xf32>, vector<4x128xf32>, vector<4x128xf32> -> vector<4x128xf32>
    %c0_10 = arith.constant 0 : index
    %c0_11 = arith.constant 0 : index
    %10 = vector.load %arg4[%c0_10, %c0_11] : memref<4x4xf32, #tpu.memory_space<vmem>>, vector<4x4xf32>
    %cst_12 = arith.constant dense<0.000000e+00> : vector<4x128xf32>
    %11 = tpu.matmul %10, %7, %cst_12 {dimension_numbers = #tpu.dot_dimension_numbers<[1], [0], [0], [1], [0, 0, 1, 1], [], []>} : vector<4x4xf32>, vector<4x128xf32>, vector<4x128xf32> -> vector<4x128xf32>
    %c0_13 = arith.constant 0 : index
    %c0_14 = arith.constant 0 : index
    %c0_15 = arith.constant 0 : index
    %12 = vector.load %arg5[%c0_13, %c0_14, %c0_15] : memref<2x4x1xf32, #tpu.memory_space<vmem>>, vector<1x4x1xf32>
    %13 = vector.shape_cast %12 : vector<1x4x1xf32> to vector<4x1xf32>
    %14 = vector.broadcast %13 : vector<4x1xf32> to vector<4x128xf32>
    %15 = arith.addf %9, %14 : vector<4x128xf32>
    %c0_16 = arith.constant 0 : index
    %c0_17 = arith.constant 0 : index
    %c0_18 = arith.constant 0 : index
    %16 = vector.load %arg6[%c0_16, %c0_17, %c0_18] : memref<1x8x128xf32, #tpu.memory_space<vmem>>, vector<1x4x128xf32>
    %17 = vector.shape_cast %16 : vector<1x4x128xf32> to vector<4x128xf32>
    %18 = vector.shape_cast %15 : vector<4x128xf32> to vector<1x4x128xf32>
    tpu.vector_store %arg6[%c0_16, %c0_17, %c0_18], %18 {strides = array<i32>} : memref<1x8x128xf32, #tpu.memory_space<vmem>>, vector<1x4x128xf32>,
    %c1_19 = arith.constant 1 : index
    %c0_20 = arith.constant 0 : index
    %c0_21 = arith.constant 0 : index
    %19 = vector.load %arg5[%c1_19, %c0_20, %c0_21] : memref<2x4x1xf32, #tpu.memory_space<vmem>>, vector<1x4x1xf32>
    %20 = vector.shape_cast %19 : vector<1x4x1xf32> to vector<4x1xf32>
    %21 = vector.broadcast %20 : vector<4x1xf32> to vector<4x128xf32>
    %22 = arith.addf %11, %21 : vector<4x128xf32>
    %c0_22 = arith.constant 0 : index
    %c4 = arith.constant 4 : index
    %c0_23 = arith.constant 0 : index
    %23 = vector.load %arg6[%c0_22, %c4, %c0_23] : memref<1x8x128xf32, #tpu.memory_space<vmem>>, vector<1x4x128xf32>
    %24 = vector.shape_cast %23 : vector<1x4x128xf32> to vector<4x128xf32>
    %25 = vector.shape_cast %22 : vector<4x128xf32> to vector<1x4x128xf32>
    tpu.vector_store %arg6[%c0_22, %c4, %c0_23], %25 {strides = array<i32>} : memref<1x8x128xf32, #tpu.memory_space<vmem>>, vector<1x4x128xf32>,
    return
  }
  func.func @transform_0(%arg0: i32, %arg1: i32) -> (i32, i32, i32, i32) {
    %c0_i32 = arith.constant 0 : i32
    %c0_i32_0 = arith.constant 0 : i32
    %c0_i32_1 = arith.constant 0 : i32
    return %c0_i32, %arg0, %c0_i32_0, %arg1 : i32, i32, i32, i32
  }
  func.func @transform_1(%arg0: i32, %arg1: i32) -> (i32, i32) {
    %c0_i32 = arith.constant 0 : i32
    %c0_i32_0 = arith.constant 0 : i32
    %c0_i32_1 = arith.constant 0 : i32
    return %c0_i32, %c0_i32_0 : i32, i32
  }
  func.func @transform_2(%arg0: i32, %arg1: i32) -> (i32, i32) {
    %c0_i32 = arith.constant 0 : i32
    %c0_i32_0 = arith.constant 0 : i32
    %c0_i32_1 = arith.constant 0 : i32
    return %c0_i32, %c0_i32_0 : i32, i32
  }
  func.func @transform_3(%arg0: i32, %arg1: i32) -> (i32, i32, i32) {
    %c0_i32 = arith.constant 0 : i32
    %c0_i32_0 = arith.constant 0 : i32
    %c0_i32_1 = arith.constant 0 : i32
    %c0_i32_2 = arith.constant 0 : i32
    return %c0_i32, %c0_i32_0, %c0_i32_1 : i32, i32, i32
  }
  func.func @transform_4(%arg0: i32, %arg1: i32) -> (i32, i32, i32) {
    %c0_i32 = arith.constant 0 : i32
    %c0_i32_0 = arith.constant 0 : i32
    return %arg0, %c0_i32, %arg1 : i32, i32, i32
  }
}

</mosaic_0001>

<bundles_post_ra>
// kernel: factorized_reduce_pallas.2
= control target key start
LH: loop header
LB: loop body
LE: loop exit
PB: predicated region body
PF: predicated region fallthrough
CT: control target
= control target key end

     0   :  { %s767_s15 = smov 0   ;;  %s769_s16 = smov 0   ;;  %s872_s0 = inlined_call_operand.vmem [shape: f32[2,2,4,128], index: 0, kind: input, shape index: {}]   ;;  %s873_s1 = inlined_call_operand.vmem [shape: f32[4,4], index: 1, kind: input, shape index: {}]   ;;  %s874_s2 = inlined_call_operand.vmem [shape: f32[4,4], index: 2, kind: input, shape index: {}]   ;;  %s875_s3 = inlined_call_operand.vmem [shape: f32[2,2,4,1], index: 3, kind: output, shape index: {0}]   ;;  %s876_s4 = inlined_call_operand.vmem [shape: f32[2,2,4,1], index: 4, kind: output, shape index: {1}]  }
   0x1   :  { %s771_s17 = smov 0   ;;  %s773_s18 = smov 0  }
   0x2   :  { %s775_s19 = smov 0  }
   0x3 LB: > { %s27_s20 = sadd.s32 1, %s734_s18  ;;  %p43_p1 = scmp.ne.s32.totalorder %s726_s16, %s722_s15  ;;  %s738_s19 = sphi %s775_s19, %s15_s19   ;;  %s734_s18 = sphi %s773_s18, %s880_s18   ;;  %s730_s17 = sphi %s771_s17, %s879_s17   ;;  %s726_s16 = sphi %s769_s16, %s878_s16   ;;  %s722_s15 = sphi %s767_s15, %s877_s15  }
   0x4   : > { %p29_p0 = scmp.ge.s32.totalorder %s27_s20, 2  ;;  %p44_p2 = scmp.eq.s32.totalorder %s738_s19, 0 }
   0x5   : > { %s36_s22 = sadd.s32 1, %s726_s16  ;;  %p622_p5 = scmp.ge.s32.totalorder %s738_s19, 2 }
   0x6   : > { %s882_s20 = smov (%p29_p0, %s27_s20), 0  ;;  %p45_p3 = por %p44_p2, %p43_p1 }
   0x7   : > { %s31_s21 = ssub.s32 %s734_s18, %s882_s20  ;;  %169 = sbr.rel (%p622_p5) target bundleno = 21 (0x15), region = 24 }
   0x8   : > { %p34_p4 = scmp.eq.s32.totalorder %s31_s21, 0 }
   0xa   : > { %s802_s23 = scalar_select %p34_p4, %s726_s16, %s36_s22  }
   0xe   : > { %172 = sbr.rel (!%p45_p3) target bundleno = 21 (0x15), region = 28  ;;  %s174_s24 = sand.u32 (%p45_p3), 1, %s726_s16  }
   0xf   : > { %s624_s25 = sshll.u32 (%p45_p3), %s734_s18, 2  ;;  %s623_s26 = sshll.u32 (%p45_p3), %s174_s24, 3 }
  0x10   : > { %s179_s29 = scalar_lea.vmem (%p45_p3), %s872_s0, %s624_s25  ;;  %s176_s30 = scalar_lea.vmem (%p45_p3), [#allocation2], %s623_s26 }
  0x11   : > { %v195_v0 = vld [vmem:[%s179_s29] sm:$0xf] (%p45_p3)  ;;  %v197_v1 = vld [vmem:[%s179_s29 + $0x8] sm:$0xf] (%p45_p3) }
  0x12   : > { %196 = vst [vmem:[%s176_s30] sm:$0xf] (%p45_p3), %v195_v0  ;;  %198 = vst [vmem:[%s176_s30 + $0x4] sm:$0xf] (%p45_p3), %v197_v1 }
  0x15 PF: > { %p625_p6 = scmp.ge.s32.totalorder %s738_s19, 1  ;;  %p224_p7 = scmp.lt.s32.totalorder %s738_s19, 3 }
  0x17   : > { %p225_p8 = pnand %p625_p6, %p224_p7 }
  0x18   : > { %s231_s5 = sand.u32 (!%p225_p8), 1, %s722_s15   ;;  %v740_v2 = vmov (!%p225_p8), 0.0   ;;  %vm741_vm0 = vmmov (!%p225_p8), 0   ;;  %vm290_vm1 = vcmask (!%p225_p8), 1043456   ;;  %v285_v4 = vld [vmem:[%s873_s1] sm:$0xf] (!%p225_p8) }
  0x19   : > { %228 = sbr.rel (%p225_p8) target bundleno = 544 (0x220), region = 69  ;;  %648 = vmatprep.subr.mxu0 (!%p225_p8), %v740_v2  ;;  %s626_s6 = sshll.u32 (!%p225_p8), %s231_s5, 3  ;;  %650 = vmatprep.mubr.msk.f32.mxu0 (!%p225_p8), %vm741_vm0, %v740_v2  ;;  %vm286_vm2 = vcmask (!%p225_p8), 31744   ;;  %v364_v8 = vld [vmem:[%s874_s2] sm:$0xf] (!%p225_p8)  ;;  %vm275_vm3 = vcmask (!%p225_p8), 3072  }
  0x1a   : > { %653 = vmatprep.subr.mxu1 (!%p225_p8), %v740_v2  ;;  %655 = vmatprep.mubr.msk.f32.mxu1 (!%p225_p8), %vm741_vm0, %v740_v2  ;;  %s233_s7 = scalar_lea.vmem (!%p225_p8), [#allocation2], %s626_s6  ;;  %p261_p9 = scmp.lt.s32.totalorder (!%p225_p8), %s730_s17, 1 }
  0x1b   : > { %v280_v3 = vld [vmem:[%s233_s7] sm:$0xf] (!%p225_p8)  ;;  %v631_v5 = vld [vmem:[%s233_s7 + $0x4] sm:$0xf] (!%p225_p8) }
  0x1c   : > { %v281_v6 = vmax.f32 (!%p225_p8), %v280_v3, 0.0  ;;  %v284_v7 = vmax.f32 (!%p225_p8), %v631_v5, 0.0 }
  0x1e   : > { %649 = vmatpush3.msk.msra.mxu0 (!%p225_p8), %vm290_vm1, %v281_v6  ;;  %654 = vmatpush3.msk.msra.mxu1 (!%p225_p8), %vm290_vm1, %v284_v7 }
  0x1f   : > { %651 = vmatmul.mubr.msk.f32.vlgmr.msra.gmra.mrb[0].mxu0 (!%p225_p8), %vm286_vm2, %v285_v4  ;;  %656 = vmatmul.mubr.msk.f32.vlgmr.msra.gmra.mrb[0].mxu1 (!%p225_p8), %vm286_vm2, %v364_v8 }
  0x20   : > { %s884_s17 = smov (!%p261_p9, %s730_s17), 1 }
  0x21   : > { %s642_s12 = sshll.u32 %s884_s17, 3 }
  0x22   : > { %s826_s15 = scalar_lea.vmem %s875_s3, %s642_s12  ;;  %s837_s22 = scalar_lea.vmem %s876_s4, %s642_s12 }
  0x23   : > { %276 = vst.msk [vmem:[%s826_s15] sm:$0xf] %vm275_vm3, %v740_v2  ;;  %277 = vst.msk [vmem:[%s826_s15 + $0x4] sm:$0xf] %vm275_vm3, %v740_v2 }
  0x24   : > { %278 = vst.msk [vmem:[%s837_s22] sm:$0xf] %vm275_vm3, %v740_v2  ;;  %279 = vst.msk [vmem:[%s837_s22 + $0x4] sm:$0xf] %vm275_vm3, %v740_v2 }
  0x2a   : > { %v469_v15 = vld [vmem:[%s826_s15] sm:$0xf]  ;;  %v636_v20 = vld [vmem:[%s826_s15 + $0x4] sm:$0xf] }
  0x2b   : > { %v480_v32 = vld [vmem:[%s837_s22] sm:$0xf]  ;;  %v638_v37 = vld [vmem:[%s837_s22 + $0x4] sm:$0xf] }
  0xf2   : > { %v360_v9 = vpop.f32.mrb[0].mxu0  ;;  %v437_v10 = vpop.f32.mrb[0].mxu1 }
  0xf3   : > { %v652_v11 = vpop.f32.mrb[1].mxu0  ;;  %v458_v12 = vsel %vm290_vm1, %v360_v9, 0.0  ;;  %v657_v13 = vpop.f32.mrb[1].mxu1  ;;  %v493_v14 = vsel %vm290_vm1, %v437_v10, 0.0 }
  0xf4   : > { %459 = vadd.xlane.f32.xlu0 %v458_v12 }
  0xf8   : > { %494 = vadd.xlane.f32.xlu0 %v493_v14 }
 0x181   : > { %v460_v16 = vpop.xlane.xlu0 %459 }
 0x182   : > { %v462_v17 = vmul.f32 0.0078125, %v460_v16 }
 0x184   : > { %v470_v18 = vsub.f32 %v462_v17, %v469_v15  ;;  %v463_v19 = vsub.f32 %v360_v9, %v462_v17 }
 0x185   : > { %v495_v21 = vpop.xlane.xlu0 %494 }
 0x186   : > { %v477_v22 = vadd.f32 %v470_v18, %v469_v15  ;;  %v496_v23 = vmul.f32 0.0078125, %v495_v21  ;;  %v465_v24 = vmul.f32 %v463_v19, %v463_v19  ;;  %v482_v31 = vmul.f32 %v470_v18, %v470_v18 }
 0x188   : > { %479 = vst.msk [vmem:[%s826_s15] sm:$0xf] %vm275_vm3, %v477_v22  ;;  %v497_v25 = vsub.f32 %v437_v10, %v496_v23  ;;  %v505_v26 = vsub.f32 %v496_v23, %v636_v20  ;;  %v466_v27 = vsel %vm290_vm1, %v465_v24, 0.0  ;;  %v489_v35 = vmul.f32 0.0, %v482_v31 }
 0x189   : > { %467 = vadd.xlane.f32.xlu1 %v466_v27 }
 0x18a   : > { %v499_v28 = vmul.f32 %v497_v25, %v497_v25  ;;  %v507_v29 = vadd.f32 %v636_v20, %v505_v26  ;;  %v512_v34 = vmul.f32 %v505_v26, %v505_v26 }
 0x18c   : > { %637 = vst.msk [vmem:[%s826_s15 + $0x4] sm:$0xf] %vm275_vm3, %v507_v29  ;;  %v500_v30 = vsel %vm290_vm1, %v499_v28, 0.0  ;;  %v513_v40 = vmul.f32 0.0, %v512_v34 }
 0x18d   : > { %501 = vadd.xlane.f32.xlu1 %v500_v30 }
 0x216   : > { %v468_v33 = vpop.xlane.xlu1 %467 }
 0x217   : > { %v481_v36 = vadd.f32 %v480_v32, %v468_v33 }
 0x219   : > { %v490_v38 = vadd.f32 %v489_v35, %v481_v36 }
 0x21a   : > { %v502_v39 = vpop.xlane.xlu1 %501 }
 0x21b   : > { %491 = vst.msk [vmem:[%s837_s22] sm:$0xf] %vm275_vm3, %v490_v38  ;;  %v511_v41 = vadd.f32 %v638_v37, %v502_v39 }
 0x21d   : > { %v514_v42 = vadd.f32 %v513_v40, %v511_v41 }
 0x21f   : > { %639 = vst.msk [vmem:[%s837_s22 + $0x4] sm:$0xf] %vm275_vm3, %v514_v42 }
 0x220 PF: > { %s15_s19 = sadd.s32 1, %s738_s19   ;;  %s877_s15 = smov %s726_s16 }
 0x221   : > { %p12_p10 = scmp.ge.s32.totalorder %s15_s19, 4   ;;  %s878_s16 = smov %s802_s23 }
 0x222   : > { %s879_s17 = smov %s734_s18  ;;  %s880_s18 = smov %s882_s20 }
 0x223   :  { %14 = sbr.rel (!%p12_p10) target bundleno = 3 (0x3), region = 127 }

// kernel: factorized_reduce_pallas.3
= control target key start
LH: loop header
LB: loop body
LE: loop exit
PB: predicated region body
PF: predicated region fallthrough
CT: control target
= control target key end

     0   :  { %s661_s15 = smov 0   ;;  %s663_s16 = smov 0   ;;  %s741_s0 = inlined_call_operand.vmem [shape: f32[2,2,4,128], index: 0, kind: input, shape index: {}]   ;;  %s742_s1 = inlined_call_operand.vmem [shape: f32[4,4], index: 1, kind: input, shape index: {}]   ;;  %s743_s2 = inlined_call_operand.vmem [shape: f32[4,4], index: 2, kind: input, shape index: {}]   ;;  %s744_s3 = inlined_call_operand.vmem [shape: f32[2,4,1], index: 3, kind: input, shape index: {}]   ;;  %s745_s4 = inlined_call_operand.vmem [shape: f32[2,8,128], index: 4, kind: output, shape index: {}]  }
   0x1   :  { %s665_s17 = smov 0   ;;  %s667_s18 = smov 0  }
   0x2   :  { %s669_s19 = smov 0  }
   0x3 LB: > { %s26_s20 = sadd.s32 1, %s627_s18  ;;  %p42_p1 = scmp.ne.s32.totalorder %s619_s16, %s615_s15  ;;  %s631_s19 = sphi %s669_s19, %s14_s19   ;;  %s627_s18 = sphi %s667_s18, %s749_s18   ;;  %s623_s17 = sphi %s665_s17, %s748_s17   ;;  %s619_s16 = sphi %s663_s16, %s747_s16   ;;  %s615_s15 = sphi %s661_s15, %s746_s15  }
   0x4   : > { %p28_p0 = scmp.ge.s32.totalorder %s26_s20, 2  ;;  %p43_p2 = scmp.eq.s32.totalorder %s631_s19, 0 }
   0x5   : > { %s35_s22 = sadd.s32 1, %s619_s16  ;;  %p521_p5 = scmp.ge.s32.totalorder %s631_s19, 2 }
   0x6   : > { %s751_s20 = smov (%p28_p0, %s26_s20), 0  ;;  %p44_p3 = por %p43_p2, %p42_p1 }
   0x7   : > { %s30_s21 = ssub.s32 %s627_s18, %s751_s20  ;;  %168 = sbr.rel (%p521_p5) target bundleno = 21 (0x15), region = 28 }
   0x8   : > { %p33_p4 = scmp.eq.s32.totalorder %s30_s21, 0 }
   0xa   : > { %s696_s23 = scalar_select %p33_p4, %s619_s16, %s35_s22  }
   0xe   : > { %171 = sbr.rel (!%p44_p3) target bundleno = 21 (0x15), region = 32  ;;  %s173_s24 = sand.u32 (%p44_p3), 1, %s619_s16  }
   0xf   : > { %s523_s25 = sshll.u32 (%p44_p3), %s627_s18, 2  ;;  %s522_s26 = sshll.u32 (%p44_p3), %s173_s24, 3 }
  0x10   : > { %s178_s29 = scalar_lea.vmem (%p44_p3), %s741_s0, %s523_s25  ;;  %s175_s30 = scalar_lea.vmem (%p44_p3), [#allocation2], %s522_s26 }
  0x11   : > { %v194_v0 = vld [vmem:[%s178_s29] sm:$0xf] (%p44_p3)  ;;  %v196_v1 = vld [vmem:[%s178_s29 + $0x8] sm:$0xf] (%p44_p3) }
  0x12   : > { %195 = vst [vmem:[%s175_s30] sm:$0xf] (%p44_p3), %v194_v0  ;;  %197 = vst [vmem:[%s175_s30 + $0x4] sm:$0xf] (%p44_p3), %v196_v1 }
  0x15 PF: > { %p524_p6 = scmp.ge.s32.totalorder %s631_s19, 1  ;;  %p223_p7 = scmp.lt.s32.totalorder %s631_s19, 3 }
  0x17   : > { %p224_p8 = pnand %p524_p6, %p223_p7 }
  0x18   : > { %s230_s5 = sand.u32 (!%p224_p8), 1, %s615_s15   ;;  %v633_v2 = vmov (!%p224_p8), 0.0   ;;  %vm281_vm0 = vcmask (!%p224_p8), 1043456   ;;  %vm634_vm1 = vmmov (!%p224_p8), 0   ;;  %v271_v3 = vld [vmem:[%s744_s3] sm:$0xf] (!%p224_p8) }
  0x19   : > { %227 = sbr.rel (%p224_p8) target bundleno = 246 (0xf6), region = 73  ;;  %539 = vmatprep.subr.mxu0 (!%p224_p8), %v633_v2  ;;  %544 = vmatprep.subr.mxu1 (!%p224_p8), %v633_v2  ;;  %s525_s6 = sshll.u32 (!%p224_p8), %s230_s5, 3  ;;  %v269_v6 = vld [vmem:[%s742_s1] sm:$0xf] (!%p224_p8)  ;;  %v635_v7 = vmov (!%p224_p8), 0   ;;  %vm277_vm2 = vcmask (!%p224_p8), 31744  }
  0x1a   : > { %541 = vmatprep.mubr.msk.f32.mxu0 (!%p224_p8), %vm634_vm1, %v633_v2  ;;  %546 = vmatprep.mubr.msk.f32.mxu1 (!%p224_p8), %vm634_vm1, %v633_v2  ;;  %s232_s9 = scalar_lea.vmem (!%p224_p8), [#allocation2], %s525_s6  ;;  %v270_v10 = vld [vmem:[%s743_s2] sm:$0xf] (!%p224_p8)  ;;  %v530_v11 = vld [vmem:[%s744_s3 + $0x4] sm:$0xf] (!%p224_p8)  ;;  %p257_p9 = scmp.lt.s32.totalorder (!%p224_p8), %s623_s17, 1 }
  0x1b   : > { %v264_v4 = vld [vmem:[%s232_s9] sm:$0xf] (!%p224_p8)  ;;  %v527_v5 = vld [vmem:[%s232_s9 + $0x4] sm:$0xf] (!%p224_p8)  ;;  %592 = vset.pattern.permute.xlu0 (!%p224_p8), %v635_v7 }
  0x1c   : > { %v265_v8 = vmax.f32 (!%p224_p8), %v264_v4, 0.0  ;;  %v268_v9 = vmax.f32 (!%p224_p8), %v527_v5, 0.0  ;;  %274 = vperm.xlu0 (!%p224_p8), %592, %v271_v3  }
  0x1e   : > { %540 = vmatpush3.msk.msra.mxu0 (!%p224_p8), %vm281_vm0, %v265_v8  ;;  %545 = vmatpush3.msk.msra.mxu1 (!%p224_p8), %vm281_vm0, %v268_v9 }
  0x1f   : > { %542 = vmatmul.mubr.msk.f32.vlgmr.msra.gmra.mrb[0].mxu0 (!%p224_p8), %vm277_vm2, %v269_v6  ;;  %547 = vmatmul.mubr.msk.f32.vlgmr.msra.gmra.mrb[0].mxu1 (!%p224_p8), %vm277_vm2, %v270_v10 }
  0x20   : > { %360 = vperm.xlu0 %592, %v530_v11   ;;  %s753_s17 = smov (!%p257_p9, %s623_s17), 1 }
  0x21   : > { %s526_s21 = sshll.u32 %s753_s17, 3 }
  0x22   : > { %s263_s25 = scalar_lea.vmem %s745_s4, %s526_s21 }
  0x9b   : > { %v275_v12 = vpop.permute.xlu0 %274 }
  0x9f   : > { %v361_v13 = vpop.permute.xlu0 %360 }
  0xf2   : > { %v351_v14 = vpop.f32.mrb[0].mxu0  ;;  %v435_v15 = vpop.f32.mrb[0].mxu1 }
  0xf3   : > { %v352_v16 = vadd.f32 %v351_v14, %v275_v12  ;;  %v436_v17 = vadd.f32 %v435_v15, %v361_v13  ;;  %v543_v18 = vpop.f32.mrb[1].mxu0  ;;  %v548_v19 = vpop.f32.mrb[1].mxu1 }
  0xf5   : > { %355 = vst [vmem:[%s263_s25] sm:$0xf] %v352_v16  ;;  %439 = vst [vmem:[%s263_s25 + $0x4] sm:$0xf] %v436_v17 }
  0xf6 PF: > { %s14_s19 = sadd.s32 1, %s631_s19   ;;  %s746_s15 = smov %s619_s16 }
  0xf7   : > { %p11_p10 = scmp.ge.s32.totalorder %s14_s19, 4   ;;  %s747_s16 = smov %s696_s23 }
  0xf8   : > { %s748_s17 = smov %s627_s18  ;;  %s749_s18 = smov %s751_s20 }
  0xf9   :  { %13 = sbr.rel (!%p11_p10) target bundleno = 3 (0x3), region = 114 }

</bundles_post_ra>
